<compile_context>
chip_gen: v7x
topology: tpu7x:2x2x1
jax: 0.10.0
libtpu: 0.0.40
codegen_flags: <defaults>
</compile_context>

<pallas_src>
import functools

import jax
import jax.numpy as jnp
from jax.experimental import pallas as pl
from jax.experimental.pallas import tpu as pltpu


def _layer_norm_kernel(x_ref, g_ref, b_ref, o_ref, *, eps, feat):
    # x_ref: (tm, feat) row tile; g_ref/b_ref: (1, feat) scale/shift (resident).
    x = x_ref[...].astype(jnp.float32)

    # Single-pass statistics: one sweep produces sum and sum-of-squares.
    s = jnp.sum(x, axis=-1, keepdims=True)
    sq = jnp.sum(x * x, axis=-1, keepdims=True)
    mean = s * (1.0 / feat)
    # torch.Tensor.std defaults to the UNBIASED estimator (divide by N-1).
    # var = (sum(x^2) - N*mean^2) / (N-1); clamp tiny negatives from cancellation.
    # (feat == 1 is undefined for unbiased std, same as torch.)
    var = jnp.maximum((sq - mean * s) * (1.0 / (feat - 1)), 0.0)
    std = jnp.sqrt(var)

    # Per-row exact reciprocal (tm elements) instead of a (tm, feat) divide.
    inv = 1.0 / (std + eps)

    y = (x - mean) * inv * g_ref[...].astype(jnp.float32) \
        + b_ref[...].astype(jnp.float32)
    o_ref[...] = y.astype(o_ref.dtype)


def _round_up(a, b):
    return ((a + b - 1) // b) * b


def _pick_block_rows(m, feat, itemsize,
                     budget_bytes=20 * 1024 * 1024, max_rows=1024):
    """Largest row tile (multiple of 8) whose double-buffered in/out tiles plus
    the f32 working set fit a VMEM budget that is safe on v5e/v6e/v7x."""
    # 2 buffers x (input + output) tiles + ~2 live f32 copies inside the body.
    per_row = 4 * feat * itemsize + 2 * feat * 4
    tm = budget_bytes // max(per_row, 1)
    tm = max(8, min(max_rows, (tm // 8) * 8))
    tm = min(tm, _round_up(m, 8))
    # Prefer >= 2 grid steps when the input allows, so v7x's two TensorCores
    # both get work (rows are independent → "parallel" axis).
    if m > 8 and pl.cdiv(m, tm) < 2:
        tm = max(8, _round_up(pl.cdiv(m, 2), 8))
    return tm


def layer_norm(x, gamma, beta, *, eps=1e-6):
    """x: (..., features); gamma/beta: (features,)."""
    orig_shape = x.shape
    feat = orig_shape[-1]
    m = 1
    for s in orig_shape[:-1]:
        m *= s
    x2 = x.reshape(m, feat)
    g2 = gamma.reshape(1, feat)
    b2 = beta.reshape(1, feat)

    itemsize = jnp.dtype(x.dtype).itemsize
    tm = _pick_block_rows(m, feat, itemsize)
    grid = (pl.cdiv(m, tm),)   # partial last block is clipped; no pad/slice copies

    cost = pl.CostEstimate(
        flops=7 * m * feat,                    # sums, sq, center, scale, shift
        transcendentals=2 * m,                 # sqrt + reciprocal per row
        bytes_accessed=2 * m * feat * itemsize
        + 2 * feat * jnp.dtype(gamma.dtype).itemsize,
    )

    kernel = functools.partial(_layer_norm_kernel, eps=float(eps), feat=feat)

    out2 = pl.pallas_call(
        kernel,
        out_shape=jax.ShapeDtypeStruct((m, feat), x.dtype),
        grid_spec=pltpu.PrefetchScalarGridSpec(
            num_scalar_prefetch=0,
            grid=grid,
            in_specs=[
                pl.BlockSpec((tm, feat), lambda i: (i, 0)),   # x row tile
                pl.BlockSpec((1, feat), lambda i: (0, 0)),    # gamma (constant index → resident)
                pl.BlockSpec((1, feat), lambda i: (0, 0)),    # beta
            ],
            out_specs=pl.BlockSpec((tm, feat), lambda i: (i, 0)),
        ),
        compiler_params=pltpu.CompilerParams(
            dimension_semantics=("parallel",),        # shard rows across TCs
            vmem_limit_bytes=32 * 1024 * 1024,        # lift v5e's 16 MiB default
        ),
        cost_estimate=cost,
    )(x2, g2, b2)

    return out2.reshape(orig_shape)


def _reference(x, gamma, beta, eps=1e-6):
    mean = jnp.mean(x, axis=-1, keepdims=True)
    # Unbiased std (N-1), matching torch.Tensor.std's default.
    var = jnp.sum((x - mean) ** 2, axis=-1, keepdims=True) / (x.shape[-1] - 1)
    std = jnp.sqrt(var)
    return gamma * (x - mean) / (std + eps) + beta


if __name__ == "__main__":
    batch, seq, features = 2, 8, 32

    key = jax.random.PRNGKey(0)
    kx, kg, kb = jax.random.split(key, 3)

    x = jax.random.normal(kx, (batch, seq, features), dtype=jnp.float32)
    # Module init is a_2=ones, b_2=zeros; perturb slightly so both the scale
    # and shift paths are actually exercised by the check.
    gamma = jnp.ones((features,), jnp.float32) \
        + 0.1 * jax.random.normal(kg, (features,), jnp.float32)
    beta = 0.1 * jax.random.normal(kb, (features,), jnp.float32)

    out = layer_norm(x, gamma, beta, eps=1e-6)
    out = jax.block_until_ready(out)

    ref = _reference(x, gamma, beta, eps=1e-6)
    assert out.shape == x.shape
    assert jnp.allclose(out, ref, atol=1e-5, rtol=1e-5), "mismatch vs reference"

    print("KERNEL_OK")
</pallas_src>

<mosaic_0001>
module attributes {stable_mosaic.version = 11 : i64} {
  func.func @_layer_norm_kernel(%arg0: i32, %arg1: memref<8x32xf32, #tpu.memory_space<vmem>>, %arg2: memref<1x32xf32, #tpu.memory_space<vmem>>, %arg3: memref<1x32xf32, #tpu.memory_space<vmem>>, %arg4: memref<8x32xf32, #tpu.memory_space<vmem>>) attributes {dimension_semantics = [#tpu.dimension_semantics<parallel>], iteration_bounds = array<i64: 2>, scalar_prefetch = 0 : i64, scratch_operands = 0 : i64, tpu.core_type = #tpu.core_type<tc>, window_params = [{transform_indices = @transform_0, window_bounds = array<i64: 8, 32>}, {pipeline_mode = #tpu.pipeline_mode<synchronous>, transform_indices = @transform_1, window_bounds = array<i64: 1, 32>}, {pipeline_mode = #tpu.pipeline_mode<synchronous>, transform_indices = @transform_2, window_bounds = array<i64: 1, 32>}, {transform_indices = @transform_3, window_bounds = array<i64: 8, 32>}]} {
    %c0 = arith.constant 0 : index
    %c0_0 = arith.constant 0 : index
    %0 = vector.load %arg1[%c0, %c0_0] : memref<8x32xf32, #tpu.memory_space<vmem>>, vector<8x32xf32>
    %cst = arith.constant dense<0.000000e+00> : vector<8xf32>
    %1 = vector.multi_reduction <add>, %0, %cst [1] : vector<8x32xf32> to vector<8xf32>
    %2 = vector.shape_cast %1 : vector<8xf32> to vector<8x1xf32>
    %3 = arith.mulf %0, %0 : vector<8x32xf32>
    %cst_1 = arith.constant dense<0.000000e+00> : vector<8xf32>
    %4 = vector.multi_reduction <add>, %3, %cst_1 [1] : vector<8x32xf32> to vector<8xf32>
    %5 = vector.shape_cast %4 : vector<8xf32> to vector<8x1xf32>
    %cst_2 = arith.constant 3.125000e-02 : f32
    %6 = vector.broadcast %cst_2 : f32 to vector<8x1xf32>
    %7 = arith.mulf %2, %6 : vector<8x1xf32>
    %8 = arith.mulf %7, %2 : vector<8x1xf32>
    %9 = arith.subf %5, %8 : vector<8x1xf32>
    %cst_3 = arith.constant 0.0322580636 : f32
    %10 = vector.broadcast %cst_3 : f32 to vector<8x1xf32>
    %11 = arith.mulf %9, %10 : vector<8x1xf32>
    %cst_4 = arith.constant 0.000000e+00 : f32
    %12 = vector.broadcast %cst_4 : f32 to vector<8x1xf32>
    %13 = arith.maximumf %11, %12 : vector<8x1xf32>
    %14 = math.sqrt %13 : vector<8x1xf32>
    %cst_5 = arith.constant 9.99999997E-7 : f32
    %15 = vector.broadcast %cst_5 : f32 to vector<8x1xf32>
    %16 = arith.addf %14, %15 : vector<8x1xf32>
    %cst_6 = arith.constant 1.000000e+00 : f32
    %17 = vector.broadcast %cst_6 : f32 to vector<8x1xf32>
    %18 = arith.divf %17, %16 : vector<8x1xf32>
    %19 = vector.broadcast %7 : vector<8x1xf32> to vector<8x32xf32>
    %20 = arith.subf %0, %19 : vector<8x32xf32>
    %21 = vector.broadcast %18 : vector<8x1xf32> to vector<8x32xf32>
    %22 = arith.mulf %20, %21 : vector<8x32xf32>
    %c0_7 = arith.constant 0 : index
    %c0_8 = arith.constant 0 : index
    %23 = vector.load %arg2[%c0_7, %c0_8] : memref<1x32xf32, #tpu.memory_space<vmem>>, vector<1x32xf32>
    %24 = vector.broadcast %23 : vector<1x32xf32> to vector<8x32xf32>
    %25 = arith.mulf %22, %24 : vector<8x32xf32>
    %c0_9 = arith.constant 0 : index
    %c0_10 = arith.constant 0 : index
    %26 = vector.load %arg3[%c0_9, %c0_10] : memref<1x32xf32, #tpu.memory_space<vmem>>, vector<1x32xf32>
    %27 = vector.broadcast %26 : vector<1x32xf32> to vector<8x32xf32>
    %28 = arith.addf %25, %27 : vector<8x32xf32>
    %c0_11 = arith.constant 0 : index
    %c0_12 = arith.constant 0 : index
    %29 = vector.load %arg4[%c0_11, %c0_12] : memref<8x32xf32, #tpu.memory_space<vmem>>, vector<8x32xf32>
    tpu.vector_store %arg4[%c0_11, %c0_12], %28 {strides = array<i32>} : memref<8x32xf32, #tpu.memory_space<vmem>>, vector<8x32xf32>,
    return
  }
  func.func @transform_0(%arg0: i32) -> (i32, i32) {
    %c0_i32 = arith.constant 0 : i32
    %c0_i32_0 = arith.constant 0 : i32
    return %arg0, %c0_i32 : i32, i32
  }
  func.func @transform_1(%arg0: i32) -> (i32, i32) {
    %c0_i32 = arith.constant 0 : i32
    %c0_i32_0 = arith.constant 0 : i32
    %c0_i32_1 = arith.constant 0 : i32
    return %c0_i32, %c0_i32_0 : i32, i32
  }
  func.func @transform_2(%arg0: i32) -> (i32, i32) {
    %c0_i32 = arith.constant 0 : i32
    %c0_i32_0 = arith.constant 0 : i32
    %c0_i32_1 = arith.constant 0 : i32
    return %c0_i32, %c0_i32_0 : i32, i32
  }
  func.func @transform_3(%arg0: i32) -> (i32, i32) {
    %c0_i32 = arith.constant 0 : i32
    %c0_i32_0 = arith.constant 0 : i32
    return %arg0, %c0_i32 : i32, i32
  }
}

</mosaic_0001>

<bundles_post_ra>
// kernel: tpu_custom_call.1
= control target key start
LH: loop header
LB: loop body
LE: loop exit
PB: predicated region body
PF: predicated region fallthrough
CT: control target
= control target key end

     0   :  { %8 = vsyncpa [#allocation3], 0  ;;  %s671_s0 = inlined_call_operand.hbm [shape: f32[16,32], index: 0, kind: input, shape index: {}]   ;;  %s672_s1 = inlined_call_operand.vmem [shape: f32[1,32], index: 1, kind: input, shape index: {}]   ;;  %s673_s2 = inlined_call_operand.vmem [shape: f32[1,32], index: 2, kind: input, shape index: {}]   ;;  %s674_s3 = inlined_call_operand.hbm [shape: f32[16,32], index: 3, kind: output, shape index: {}]  }
   0x1   :  { %10 = vsyncpa [#allocation3 + $0x1], 0 }
   0x2   :  { %11 = vsyncpa [#allocation4], 0 }
   0x3   :  { %13 = vsyncpa [#allocation4 + $0x1], 0  ;;  %s497_s12 = smov 0   ;;  %s499_s13 = smov 0  }
   0x4   :  { %s501_s14 = smov 0   ;;  %s503_s15 = smov 0  }
   0x5 LB: > { %s518_s16 = sadd.s32 4294967295, %s473_s15   ;;  %s313_s17 = sadd.s32 4294967294, %s473_s15   ;;  %s473_s15 = sphi %s503_s15, %s689_s15   ;;  %s469_s14 = sphi %s501_s14, %s688_s14   ;;  %s465_s13 = sphi %s499_s13, %s687_s13   ;;  %s461_s12 = sphi %s497_s12, %s686_s12  }
   0x6   : > { %s522_s18 = sadd.s32 1, %s473_s15   ;;  %s26_s19 = sadd.s32 1, %s469_s14 }
   0x7   : > { %s23_s20 = ssub.s32 %s473_s15, %s522_s18  ;;  %p33_p0 = scmp.ne.s32.totalorder %s469_s14, %s465_s13 }
   0x8   : > { %p24_p1 = scmp.eq.s32.totalorder %s23_s20, 0  ;;  %p34_p2 = scmp.eq.s32.totalorder %s473_s15, 0 }
   0x9   : > { %p39_p3 = scmp.ne.s32.totalorder %s465_s13, %s461_s12  ;;  %p40_p4 = scmp.eq.s32.totalorder %s518_s16, 0 }
   0xa   : > { %s534_s21 = scalar_select %p24_p1, %s469_s14, %s26_s19  }
   0xb   : > { %p536_p5 = por %p34_p2, %p33_p0  ;;  %p540_p6 = por %p40_p4, %p39_p3 }
   0xc   : > { %p105_p7 = scmp.eq.s32.totalorder %s518_s16, 1  ;;  %p111_p8 = scmp.eq.s32.totalorder %s313_s17, 1 }
   0xd   : > { %p339_p10 = scmp.lt.s32.totalorder %s473_s15, 2  ;;  %s137_s26 = sand.u32 1, %s469_s14  }
   0xe   : > { %p547_p11 = por %p105_p7, %p33_p0  ;;  %p551_p12 = por %p111_p8, %p39_p3 }
   0xf   : > { %s317_s27 = sshll.u32 %s473_s15, 7  ;;  %s316_s28 = sshll.u32 %s137_s26, 3 }
  0x10   : > { %s678_s24 = scalar_select %p547_p11, 1, 0 }
  0x11   : > { %s679_s25 = scalar_select %p551_p12, 1, 0 }
  0x12   : > { %s560_s4 = scalar_lea.hbm %s671_s0, %s317_s27  ;;  %s141_s5 = scalar_lea.vmem [#allocation2], %s316_s28 }
  0x13   : > { %s148_s6 = sshll.u32 %s141_s5, 4  ;;  %p564_p13 = pnand %p339_p10, %p536_p5  ;;  %s568_s6 = int_to_ptr.vmem [resolvable:$true] %s148_s6 }
  0x14   : > { %s138_s8 = scalar_lea.sflag [#allocation3], %s137_s26  ;;  %s377_s9 = scalar_lea.hbm %s560_s4, 128 }
  0x15   : > { %p378_p2 = scmp.ne.s32.totalorder %s560_s4, %s377_s9  ;;  %p379_p3 = pneg %p564_p13 }
  0x16   : > { %s382_s17 = scalar_lea.hbm %s671_s0, 256  ;;  %p383_p5 = scmp.lt.u32.totalorder %s560_s4, %s671_s0 }
  0x17   : > { %p380_p4 = pnand %p379_p3, %p378_p2  ;;  %p384_p8 = scmp.lt.u32.totalorder %s382_s17, %s377_s9 }
  0x18   : > { %p386_p9 = scmp.lt.u32.totalorder %s377_s9, %s560_s4 }
  0x19   : > { %p381_p7 = pneg %p380_p4  ;;  %p385_p10 = por %p384_p8, %p383_p5 }
  0x1b   : > { %p387_p0 = por %p386_p9, %p385_p10 }
  0x1d   : > { %p388_p1 = pnand %p387_p0, %p381_p7 }
  0x1f   : > { %391 = shalt.err (!%p388_p1)
}
  0x20   : > { %s392_s22 = scalar_lea.vmem %s568_s6, 128  ;;  %s475_s26 = smov [#allocation2]  }
  0x21   : > { %p393_p2 = scmp.ne.s32.totalorder %s568_s6, %s392_s22  ;;  %s397_s27 = sshll.u32 %s475_s26, 4  ;;  %s398_s27 = int_to_ptr.vmem [resolvable:$false] %s397_s27 }
  0x22   : > { %s399_s28 = scalar_lea.vmem %s398_s27, 256  ;;  %p400_p11 = scmp.lt.s32.totalorder %s568_s6, %s398_s27 }
  0x23   : > { %p395_p4 = pnand %p393_p2, %p379_p3  ;;  %p401_p5 = scmp.lt.s32.totalorder %s399_s28, %s392_s22 }
  0x25   : > { %p396_p12 = pneg %p395_p4  ;;  %p402_p8 = por %p401_p5, %p400_p11 }
  0x27   : > { %p403_p9 = pnand %p402_p8, %p396_p12 }
  0x29   : > { %406 = shalt.err (!%p403_p9)
}
  0x2a   : > { %334 = dma.hbm_to_vmem [thread:$0]  (!%p564_p13), %s560_s4, 128, %s568_s6, %s138_s8  }
  0x2b   : > { %p681_p0 = scmp.lt.s32.totalorder %s473_s15, 3  ;;  %p682_p1 = scmp.ge.s32.totalorder %s473_s15, 1 }
  0x2d   : > { %p154_p3 = pnand %p682_p1, %p681_p0 }
  0x2e   : > { %s602_s29 = sand.u32 (!%p154_p3), 1, %s465_s13  }
  0x2f   : > { %157 = sbr.rel (%p154_p3) target bundleno = 257 (0x101), region = 32  ;;  %s319_s30 = sshll.u32 (!%p154_p3), %s602_s29, 3 }
  0x30   : > { %s160_s5 = scalar_lea.sflag (!%p154_p3), [#allocation3], %s602_s29  ;;  %s163_s7 = scalar_lea.vmem (!%p154_p3), [#allocation2], %s319_s30 }
  0x36   : > { %452 = dma.done.wait (%p540_p6), %s160_s5, 128  }
  0x37   : > { %454 = vsyncadd (%p540_p6), %s160_s5, 4294967168  ;;  %vm187_vm0 = vcmask 261120   ;;  %v186_v0 = vld [vmem:[%s163_s7] sm:$0xff]  ;;  %s324_s9 = sshll.u32 %s518_s16, 7  ;;  %s185_s10 = scalar_lea.vmem [#allocation5], %s319_s30 }
  0x38   : > { %v188_v1 = vsel %vm187_vm0, %v186_v0, 0.0  ;;  %v191_v2 = vmul.f32 %v186_v0, %v186_v0  ;;  %v321_v19 = vld [vmem:[%s672_s1] ss:$0 sm:$0xff]  ;;  %s243_s11 = sshll.u32 %s185_s10, 4  ;;  %s626_s20 = scalar_lea.hbm %s674_s3, %s324_s9  ;;  %s628_s11 = int_to_ptr.vmem [resolvable:$true] %s243_s11 }
  0x39   : > { %189 = vadd.xlane.f32.xlu0 %v188_v1  ;;  %v322_v21 = vld [vmem:[%s673_s2] ss:$0 sm:$0xff]  ;;  %s230_s22 = scalar_lea.sflag [#allocation4], %s602_s29  ;;  %s407_s26 = scalar_lea.vmem %s628_s11, 128 }
  0x3a   : > { %v192_v3 = vsel %vm187_vm0, %v191_v2, 0.0  ;;  %p408_p6 = scmp.ne.s32.totalorder %s628_s11, %s407_s26  ;;  %p683_p11 = scmp.ne.s32.totalorder %s678_s24, 0 }
  0x3b   : > { %s476_s16 = smov [#allocation5]  }
  0x3c   : > { %p409_p12 = pnand %p408_p6, %p683_p11  ;;  %s411_s27 = sshll.u32 %s476_s16, 4  ;;  %s412_s27 = int_to_ptr.vmem [resolvable:$false] %s411_s27 }
  0x3d   : > { %193 = vadd.xlane.f32.xlu0 %v192_v3  ;;  %s413_s28 = scalar_lea.vmem %s412_s27, 256  ;;  %p414_p7 = scmp.lt.s32.totalorder %s628_s11, %s412_s27 }
  0x3e   : > { %p410_p13 = pneg %p409_p12  ;;  %p415_p10 = scmp.lt.s32.totalorder %s413_s28, %s407_s26 }
  0x40   : > { %p416_p2 = por %p415_p10, %p414_p7 }
  0x42   : > { %p417_p4 = pnand %p416_p2, %p410_p13 }
  0xc6   : > { %v190_v4 = vpop.xlane.xlu0 %189 }
  0xc7   : > { %v195_v5 = vmul.f32 0.03125, %v190_v4 }
  0xc9   : > { %v196_v6 = vmul.f32 %v195_v5, %v190_v4  ;;  %v210_v17 = vsub.f32 %v186_v0, %v195_v5 }
  0xca   : > { %v194_v7 = vpop.xlane.xlu0 %193 }
  0xcb   : > { %v197_v8 = vsub.f32 %v194_v7, %v196_v6 }
  0xcd   : > { %v198_v9 = vmul.f32 0.032258064, %v197_v8 }
  0xcf   : > { %v199_v10 = vmax.f32 %v198_v9, 0.0 }
  0xd1   : > { %373 = vrsqrt.f32 %v199_v10  ;;  %vm202_vm1 = vcmp.eq.f32.partialorder %v199_v10, inf  ;;  %v205_v13 = vand.u32 2147483648, %v199_v10  ;;  %vm204_vm2 = vcmp.eq.f32.partialorder %v199_v10, 0.0 }
  0xdb   : > { %v374_v11 = vpop.eup %373 }
  0xdc   : > { %v201_v12 = vmul.f32 %v374_v11, %v199_v10 }
  0xde   : > { %v203_v14 = vsel %vm202_vm1, %v199_v10, %v201_v12 }
  0xdf   : > { %v206_v15 = vsel %vm204_vm2, %v205_v13, %v203_v14 }
  0xe0   : > { %v207_v16 = vadd.f32 1e-06, %v206_v15 }
  0xe2   : > { %375 = vrcp.f32 %v207_v16 }
  0xec   : > { %v376_v18 = vpop.eup %375 }
  0xed   : > { %v211_v20 = vmul.f32 %v376_v18, %v210_v17 }
  0xef   : > { %v219_v22 = vmul.f32 %v321_v19, %v211_v20 }
  0xf1   : > { %v227_v23 = vadd.f32 %v322_v21, %v219_v22 }
  0xf3   : > { %228 = vst.msk [vmem:[%s185_s10] sm:$0xff] %vm187_vm0, %v227_v23 }
  0xf4   : > { %420 = shalt.err (!%p417_p4)
}
  0xf5   : > { %s421_s29 = scalar_lea.hbm %s626_s20, 128  ;;  %s425_s7 = scalar_lea.hbm %s674_s3, 256 }
  0xf6   : > { %p422_p5 = scmp.ne.s32.totalorder %s626_s20, %s421_s29  ;;  %p426_p0 = scmp.lt.u32.totalorder %s626_s20, %s674_s3 }
  0xf7   : > { %p427_p1 = scmp.lt.u32.totalorder %s425_s7, %s421_s29  ;;  %p429_p6 = scmp.lt.u32.totalorder %s421_s29, %s626_s20 }
  0xf8   : > { %p423_p8 = pnand %p422_p5, %p683_p11 }
  0xf9   : > { %p428_p3 = por %p427_p1, %p426_p0 }
  0xfa   : > { %p424_p9 = pneg %p423_p8 }
  0xfb   : > { %p430_p12 = por %p429_p6, %p428_p3 }
  0xfd   : > { %p431_p13 = pnand %p430_p12, %p424_p9 }
  0xff   : > { %434 = shalt.err (!%p431_p13)
}
 0x100   : > { %329 = dma.vmem_to_hbm [thread:$0]  (%p683_p11), %s628_s11, 128, %s626_s20, %s230_s22  }
 0x101 PF: > { %s255_s6 = sand.u32 1, %s461_s12   ;;  %p684_p7 = scmp.ne.s32.totalorder %s679_s25, 0 }
 0x102   : > { %p685_p10 = scmp.ge.s32.totalorder %s473_s15, 2  ;;  %s256_s8 = scalar_lea.sflag [#allocation4], %s255_s6 }
 0x104   : > { %p336_p2 = pnand %p685_p10, %p684_p7 }
 0x106   : > { %456 = dma.done.wait (!%p336_p2), %s256_s8, 128  }
 0x107   : > { %458 = vsyncadd (!%p336_p2), %s256_s8, 4294967168  ;;  %p16_p4 = scmp.ge.s32.totalorder %s522_s18, 4   ;;  %s686_s12 = smov %s465_s13 }
 0x108   : > { %s687_s13 = smov %s469_s14  ;;  %s688_s14 = smov %s534_s21 }
 0x109   : > { %s689_s15 = smov %s522_s18  ;;  %18 = sbr.rel (!%p16_p4) target bundleno = 5 (0x5), region = 77 }
 0x110   :  { %261 = vsyncpa [#allocation3], 1 }
 0x111   :  { %263 = vsyncpa [#allocation3 + $0x1], 1 }
 0x112   :  { %264 = vsyncpa [#allocation4], 1 }
 0x113   :  { %266 = vsyncpa [#allocation4 + $0x1], 1 }

</bundles_post_ra>
